<compile_context>
chip_gen: v6e
topology: v6e:2x2x1
jax: 0.10.0
libtpu: 0.0.40
codegen_flags: <defaults>
</compile_context>

<pallas_src>
from functools import partial

import jax
import jax.numpy as jnp
from jax.experimental import pallas as pl
from jax.experimental.pallas import tpu as pltpu


def _round_up(x, m):
    return ((x + m - 1) // m) * m


def _cdiv(a, b):
    return (a + b - 1) // b


def hamming_window(L):
    # torch.hamming_window(L) default (periodic): 0.54 - 0.46*cos(2*pi*n/L)
    n = jnp.arange(L, dtype=jnp.float32)
    return 0.54 - 0.46 * jnp.cos(2.0 * jnp.pi * n / L)


def _reduced_windowed_dft(L, window):
    """(L, L) matrix: per-frame cols = [real bins 0..F-1, imag bins 1..n_imag].

    The always-zero imaginary columns (DC, and Nyquist for even L) are dropped,
    so the per-frame slot is exactly L columns wide. Window is folded in.
    """
    F = L // 2 + 1
    n_imag = L - F                                   # nonzero imag bins 1..n_imag
    n = jnp.arange(L, dtype=jnp.float32)
    f_re = jnp.arange(F, dtype=jnp.float32)
    f_im = jnp.arange(1, 1 + n_imag, dtype=jnp.float32)
    ang_re = 2.0 * jnp.pi * n[:, None] * f_re[None, :] / L
    ang_im = 2.0 * jnp.pi * n[:, None] * f_im[None, :] / L
    dft = jnp.concatenate([jnp.cos(ang_re), -jnp.sin(ang_im)], axis=1)  # (L, L)
    return window.astype(jnp.float32)[:, None] * dft


# ---------------------------------------------------------------------------
# Kernels
# ---------------------------------------------------------------------------
def _stft_halo_kernel(x_ref, h_ref, m0_ref, m1_ref, o_ref):
    # Frames are formed implicitly by the block-structured matrices:
    # out = signal_rows @ M0 + halo @ M1  (MXU, f32 accumulation).
    o_ref[...] = (
        jnp.dot(x_ref[...], m0_ref[...], preferred_element_type=jnp.float32)
        + jnp.dot(h_ref[...], m1_ref[...], preferred_element_type=jnp.float32)
    )


def _stft_frames_kernel(fr_ref, w_ref, o_ref):
    o_ref[...] = jnp.dot(fr_ref[...], w_ref[...], preferred_element_type=jnp.float32)


# ---------------------------------------------------------------------------
# Block / VMEM sizing
# ---------------------------------------------------------------------------
_VMEM_TILE_BUDGET = 40 * 1024 * 1024          # stays well under v7x's 64 MiB


def _pick_block_rows(rows, other_steps, row_bytes, fixed_bytes):
    avail = max(_VMEM_TILE_BUDGET - 2 * fixed_bytes, 2 * 1024 * 1024)
    cap = max(8, min(4096, (avail // (2 * row_bytes)) // 8 * 8))
    if rows <= cap:
        if other_steps <= 1 and rows > 8:
            # keep >= 2 grid steps so both v7x TensorCores get work
            return _round_up(_cdiv(rows, 2), 8)
        return _round_up(rows, 8)
    n_steps = _cdiv(rows, cap)
    return _round_up(_cdiv(rows, n_steps), 8)


def _vmem_limit(block_rows, row_bytes, fixed_bytes):
    need = 2 * block_rows * row_bytes + 2 * fixed_bytes
    return int(min(48 * 1024 * 1024, max(32 * 1024 * 1024, need + 8 * 1024 * 1024)))


# ---------------------------------------------------------------------------
# Fast path: in-kernel framing (128 % stride == 0, stride < L <= 128 + stride)
# ---------------------------------------------------------------------------
def _stft_fast(mixture, W, *, L, stride, n_frames, T_pad):
    B, T = mixture.shape
    fpr = 128 // stride                  # frames that start inside one 128-sample row
    H = L - stride                       # halo samples needed from the next row
    ucols = L                            # informative columns per frame
    cols_slot = _round_up(ucols, stride)  # fpr * cols_slot is a multiple of 128
    OUTC = fpr * cols_slot

    # Block-structured windowed-DFT: frame k of a row reads samples
    # [k*stride, k*stride + L); rows beyond 128 come from the halo input.
    m_full = jnp.zeros((128 + H, OUTC), jnp.float32)
    for k in range(fpr):
        m_full = m_full.at[k * stride:k * stride + L,
                           k * cols_slot:k * cols_slot + ucols].set(W)
    m0, m1 = m_full[:128], m_full[128:]

    # One zero-pad of the raw signal covers pad_segment, the 128-sample row
    # reshape, the extra halo row, and the row-block rounding.
    rows_pb = _cdiv(n_frames, fpr) + 1   # +1 row so the last rows' halo is real data
    row_bytes = 4 * (128 + H + OUTC)
    fixed_bytes = 4 * (128 + H) * OUTC
    block_rows = _pick_block_rows(rows_pb, B, row_bytes, fixed_bytes)
    rows_pad = _round_up(rows_pb, block_rows)

    sig = jnp.pad(mixture.astype(jnp.float32), ((0, 0), (0, rows_pad * 128 - T)))
    x3 = sig.reshape(B, rows_pad, 128)
    halo3 = jnp.concatenate(
        [x3[:, 1:, :H], jnp.zeros((B, 1, H), jnp.float32)], axis=1)

    out = pl.pallas_call(
        _stft_halo_kernel,
        out_shape=jax.ShapeDtypeStruct((B, rows_pad, OUTC), jnp.float32),
        grid=(B, rows_pad // block_rows),
        in_specs=[
            pl.BlockSpec((None, block_rows, 128), lambda b, j: (b, j, 0)),
            pl.BlockSpec((None, block_rows, H), lambda b, j: (b, j, 0)),
            pl.BlockSpec((128, OUTC), lambda b, j: (0, 0)),
            pl.BlockSpec((H, OUTC), lambda b, j: (0, 0)),
        ],
        out_specs=pl.BlockSpec((None, block_rows, OUTC), lambda b, j: (b, j, 0)),
        compiler_params=pltpu.CompilerParams(
            dimension_semantics=("parallel", "parallel"),
            vmem_limit_bytes=_vmem_limit(block_rows, row_bytes, fixed_bytes),
        ),
    )(x3, halo3, m0, m1)

    # (B, rows_pad, fpr*cols_slot) -> (B, frames, cols_slot) -> valid frames/cols
    out = out.reshape(B, rows_pad * fpr, cols_slot)
    return out[:, :n_frames, :ucols]


# ---------------------------------------------------------------------------
# Generic fallback: gather-based framing (arbitrary L / stride)
# ---------------------------------------------------------------------------
def _stft_generic(mixture, W, *, L, stride, n_frames, T_pad):
    # TODO(synk): this path still materializes the frames slab via an XLA
    # gather; only the fast path above forms frames inside the kernel.
    B, T = mixture.shape
    ucols = L
    CS = _round_up(ucols, 128)
    w_pad = jnp.zeros((L, CS), jnp.float32).at[:, :ucols].set(W)

    sig = jnp.pad(mixture.astype(jnp.float32), ((0, 0), (0, T_pad - T)))
    idx = (jnp.arange(n_frames) * stride)[:, None] + jnp.arange(L)[None, :]
    frames = sig[:, idx].reshape(B * n_frames, L)

    M = B * n_frames
    row_bytes = 4 * (L + CS)
    fixed_bytes = 4 * L * CS
    block_rows = _pick_block_rows(M, 1, row_bytes, fixed_bytes)
    M_pad = _round_up(M, block_rows)
    if M_pad > M:
        frames = jnp.pad(frames, ((0, M_pad - M), (0, 0)))

    out = pl.pallas_call(
        _stft_frames_kernel,
        out_shape=jax.ShapeDtypeStruct((M_pad, CS), jnp.float32),
        grid=(M_pad // block_rows,),
        in_specs=[
            pl.BlockSpec((block_rows, L), lambda i: (i, 0)),
            pl.BlockSpec((L, CS), lambda i: (0, 0)),
        ],
        out_specs=pl.BlockSpec((block_rows, CS), lambda i: (i, 0)),
        compiler_params=pltpu.CompilerParams(
            dimension_semantics=("parallel",),
            vmem_limit_bytes=_vmem_limit(block_rows, row_bytes, fixed_bytes),
        ),
    )(frames, w_pad)

    return out[:M, :ucols].reshape(B, n_frames, ucols)


# ---------------------------------------------------------------------------
# Forward
# ---------------------------------------------------------------------------
@partial(jax.jit, static_argnames=("L", "stride"))
def encoder_forward(mixture, window, *, L, stride):
    """Pallas equivalent of Encoder.forward: (B, T) -> (B, 2, n_frames, L//2+1)."""
    B, T = mixture.shape
    F = L // 2 + 1

    # pad_segment (static shape arithmetic; r is always in [1, stride])
    r = stride - (T - L) % stride
    T_pad = T + r
    n_frames = 1 + (T_pad - L) // stride

    W = _reduced_windowed_dft(L, window)          # window folded into the DFT

    if 128 % stride == 0 and stride < L <= 128 + stride:
        spec = _stft_fast(mixture, W, L=L, stride=stride,
                          n_frames=n_frames, T_pad=T_pad)
    else:
        spec = _stft_generic(mixture, W, L=L, stride=stride,
                             n_frames=n_frames, T_pad=T_pad)

    # Re-insert the always-zero imaginary columns and emit the final
    # (B, 2, n_frames, F) layout with simple slices + stack (no big transpose).
    real = spec[..., :F]
    imag = jnp.pad(spec[..., F:], ((0, 0), (0, 0), (1, F - 1 - (L - F))))
    return jnp.stack([real, imag], axis=1)


if __name__ == "__main__":
    # Module hyper-params (N is stored by the module but unused in forward).
    N, L = 64, 32
    stride = L // 2
    window = hamming_window(L)          # deterministic parameter (no grad)
    key = jax.random.PRNGKey(0)

    def reference(mix):
        T = mix.shape[-1]
        r = stride - (T - L) % stride
        mp = jnp.pad(mix, ((0, 0), (0, r)))
        nf = 1 + (mp.shape[-1] - L) // stride
        idx = (jnp.arange(nf) * stride)[:, None] + jnp.arange(L)[None, :]
        fr = mp[:, idx] * window[None, None, :]
        sp = jnp.fft.rfft(fr, axis=-1)
        return jnp.stack([sp.real, sp.imag], axis=1)

    for i, (B, T) in enumerate([(2, 100), (3, 1000)]):
        mix = jax.random.normal(jax.random.fold_in(key, i), (B, T), jnp.float32)
        out = jax.block_until_ready(encoder_forward(mix, window, L=L, stride=stride))
        ref = reference(mix)
        assert out.shape == ref.shape, (out.shape, ref.shape)
        err = float(jnp.max(jnp.abs(out - ref)))
        assert jnp.allclose(out, ref, atol=2e-3, rtol=2e-3), err

    print("KERNEL_OK")
</pallas_src>

<mosaic_0001>
module attributes {stable_mosaic.version = 11 : i64} {
  func.func @_stft_halo_kernel(%arg0: i32, %arg1: i32, %arg2: memref<1x8x128xf32, #tpu.memory_space<vmem>>, %arg3: memref<1x8x16xf32, #tpu.memory_space<vmem>>, %arg4: memref<128x256xf32, #tpu.memory_space<vmem>>, %arg5: memref<16x256xf32, #tpu.memory_space<vmem>>, %arg6: memref<1x8x256xf32, #tpu.memory_space<vmem>>) attributes {dimension_semantics = [#tpu.dimension_semantics<parallel>, #tpu.dimension_semantics<parallel>], iteration_bounds = array<i64: 2, 1>, scalar_prefetch = 0 : i64, scratch_operands = 0 : i64, tpu.core_type = #tpu.core_type<tc>, window_params = [{transform_indices = @transform_0, window_bounds = array<i64: 1, 8, 128>}, {transform_indices = @transform_1, window_bounds = array<i64: 1, 8, 16>}, {pipeline_mode = #tpu.pipeline_mode<synchronous>, transform_indices = @transform_2, window_bounds = array<i64: 128, 256>}, {pipeline_mode = #tpu.pipeline_mode<synchronous>, transform_indices = @transform_3, window_bounds = array<i64: 16, 256>}, {transform_indices = @transform_4, window_bounds = array<i64: 1, 8, 256>}]} {
    %c0 = arith.constant 0 : index
    %c0_0 = arith.constant 0 : index
    %c0_1 = arith.constant 0 : index
    %0 = vector.load %arg2[%c0, %c0_0, %c0_1] : memref<1x8x128xf32, #tpu.memory_space<vmem>>, vector<1x8x128xf32>
    %1 = vector.shape_cast %0 : vector<1x8x128xf32> to vector<8x128xf32>
    %c0_2 = arith.constant 0 : index
    %c0_3 = arith.constant 0 : index
    %2 = vector.load %arg4[%c0_2, %c0_3] : memref<128x256xf32, #tpu.memory_space<vmem>>, vector<128x256xf32>
    %cst = arith.constant dense<0.000000e+00> : vector<8x256xf32>
    %3 = tpu.matmul %1, %2, %cst {dimension_numbers = #tpu.dot_dimension_numbers<[1], [0], [0], [1], [0, 0, 1, 1], [], []>} : vector<8x128xf32>, vector<128x256xf32>, vector<8x256xf32> -> vector<8x256xf32>
    %c0_4 = arith.constant 0 : index
    %c0_5 = arith.constant 0 : index
    %c0_6 = arith.constant 0 : index
    %4 = vector.load %arg3[%c0_4, %c0_5, %c0_6] : memref<1x8x16xf32, #tpu.memory_space<vmem>>, vector<1x8x16xf32>
    %5 = vector.shape_cast %4 : vector<1x8x16xf32> to vector<8x16xf32>
    %c0_7 = arith.constant 0 : index
    %c0_8 = arith.constant 0 : index
    %6 = vector.load %arg5[%c0_7, %c0_8] : memref<16x256xf32, #tpu.memory_space<vmem>>, vector<16x256xf32>
    %cst_9 = arith.constant dense<0.000000e+00> : vector<8x256xf32>
    %7 = tpu.matmul %5, %6, %cst_9 {dimension_numbers = #tpu.dot_dimension_numbers<[1], [0], [0], [1], [0, 0, 1, 1], [], []>} : vector<8x16xf32>, vector<16x256xf32>, vector<8x256xf32> -> vector<8x256xf32>
    %8 = arith.addf %3, %7 : vector<8x256xf32>
    %c0_10 = arith.constant 0 : index
    %c0_11 = arith.constant 0 : index
    %c0_12 = arith.constant 0 : index
    %9 = vector.load %arg6[%c0_10, %c0_11, %c0_12] : memref<1x8x256xf32, #tpu.memory_space<vmem>>, vector<1x8x256xf32>
    %10 = vector.shape_cast %9 : vector<1x8x256xf32> to vector<8x256xf32>
    %11 = vector.shape_cast %8 : vector<8x256xf32> to vector<1x8x256xf32>
    tpu.vector_store %arg6[%c0_10, %c0_11, %c0_12], %11 {strides = array<i32>} : memref<1x8x256xf32, #tpu.memory_space<vmem>>, vector<1x8x256xf32>,
    return
  }
  func.func @transform_0(%arg0: i32, %arg1: i32) -> (i32, i32, i32) {
    %c0_i32 = arith.constant 0 : i32
    %c0_i32_0 = arith.constant 0 : i32
    return %arg0, %arg1, %c0_i32 : i32, i32, i32
  }
  func.func @transform_1(%arg0: i32, %arg1: i32) -> (i32, i32, i32) {
    %c0_i32 = arith.constant 0 : i32
    %c0_i32_0 = arith.constant 0 : i32
    return %arg0, %arg1, %c0_i32 : i32, i32, i32
  }
  func.func @transform_2(%arg0: i32, %arg1: i32) -> (i32, i32) {
    %c0_i32 = arith.constant 0 : i32
    %c0_i32_0 = arith.constant 0 : i32
    %c0_i32_1 = arith.constant 0 : i32
    return %c0_i32, %c0_i32_0 : i32, i32
  }
  func.func @transform_3(%arg0: i32, %arg1: i32) -> (i32, i32) {
    %c0_i32 = arith.constant 0 : i32
    %c0_i32_0 = arith.constant 0 : i32
    %c0_i32_1 = arith.constant 0 : i32
    return %c0_i32, %c0_i32_0 : i32, i32
  }
  func.func @transform_4(%arg0: i32, %arg1: i32) -> (i32, i32, i32) {
    %c0_i32 = arith.constant 0 : i32
    %c0_i32_0 = arith.constant 0 : i32
    return %arg0, %arg1, %c0_i32 : i32, i32, i32
  }
}

</mosaic_0001>

<bundles_post_ra>
// kernel: encoder_forward.1
= control target key start
LH: loop header
LB: loop body
LE: loop exit
PB: predicated region body
PF: predicated region fallthrough
CT: control target
= control target key end

     0   :  { %s631_s15 = smov 0   ;;  %s633_s16 = smov 0   ;;  %s783_s0 = inlined_call_operand.vmem [shape: f32[2,8,128], index: 0, kind: input, shape index: {}]   ;;  %s784_s1 = inlined_call_operand.vmem [shape: f32[2,8,16], index: 1, kind: input, shape index: {}]   ;;  %s785_s2 = inlined_call_operand.vmem [shape: f32[128,256], index: 2, kind: input, shape index: {}]   ;;  %s786_s3 = inlined_call_operand.vmem [shape: f32[16,256], index: 3, kind: input, shape index: {}]   ;;  %s787_s4 = inlined_call_operand.vmem [shape: f32[2,8,256], index: 4, kind: output, shape index: {}]  }
   0x1   :  { %s635_s17 = smov 0  }
   0x2 LB: > { %s26_s18 = sadd.s32 1, %s599_s16  ;;  %p547_p0 = scmp.ge.s32.totalorder %s603_s17, 1  ;;  %s603_s17 = sphi %s635_s17, %s14_s17   ;;  %s599_s16 = sphi %s633_s16, %s789_s16   ;;  %s595_s15 = sphi %s631_s15, %s788_s15  }
   0x3   : > { %p28_p1 = scmp.ge.s32.totalorder %s26_s18, 2  ;;  %p194_p2 = scmp.lt.s32.totalorder %s603_s17, 3 }
   0x5   : > { %s791_s18 = smov (%p28_p1, %s26_s18), 0  ;;  %p195_p3 = pnand %p547_p0, %p194_p2 }
   0x6   : > { %p233_p4 = scmp.lt.s32.totalorder (!%p195_p3), %s595_s15, 1 }
   0x7   : > { %198 = sbr.rel (%p195_p3) target bundleno = 243 (0xf3), region = 36 }
   0xc   : > { %v288_v0 = vld [vmem:[%s785_s2 + $0xf8] sm:$0xff]  ;;  %v287_v1 = vld [vmem:[%s785_s2 + $0xf0] sm:$0xff]  ;;  %v286_v2 = vld [vmem:[%s785_s2 + $0xe8] sm:$0xff]  ;;  %v605_v4 = vmov 0.0   ;;  %s793_s15 = smov (!%p233_p4, %s595_s15), 1  ;;  %vm294_vm0 = vcmask 130048  }
   0xd   : > { %369 = vmatprep.subr.mxu1 %v288_v0  ;;  %v285_v3 = vld [vmem:[%s785_s2 + $0xe0] sm:$0xff]  ;;  %362 = vmatprep.mubr.f32.mxu0 %v605_v4  ;;  %v284_v5 = vld [vmem:[%s785_s2 + $0xd8] sm:$0xff]  ;;  %v283_v6 = vld [vmem:[%s785_s2 + $0xd0] sm:$0xff]  ;;  %s548_s9 = sshll.u32 %s793_s15, 3  ;;  %s555_s8 = sshll.u32 %s793_s15, 4 }
   0xe   : > { %370 = vmatpush1.msra.mxu1 %v287_v1  ;;  %433 = vmatprep.mubr.f32.mxu1 %v605_v4  ;;  %v282_v7 = vld [vmem:[%s785_s2 + $0xc8] sm:$0xff]  ;;  %v281_v8 = vld [vmem:[%s785_s2 + $0xc0] sm:$0xff]  ;;  %v280_v9 = vld [vmem:[%s785_s2 + $0xb8] sm:$0xff]  ;;  %s246_s24 = scalar_lea.vmem %s784_s1, %s548_s9  ;;  %s239_s29 = scalar_lea.vmem %s783_s0, %s548_s9 }
   0xf   : > { %371 = vmatprep.subr.mxu1 %v286_v2  ;;  %v279_v10 = vld [vmem:[%s785_s2 + $0xb0] sm:$0xff]  ;;  %v278_v11 = vld [vmem:[%s785_s2 + $0xa8] sm:$0xff]  ;;  %v293_v12 = vld [vmem:[%s786_s3 + $0x18] sm:$0xff]  ;;  %s255_s9 = scalar_lea.vmem %s787_s4, %s555_s8 }
  0x10   : > { %372 = vmatpush1.msra.mxu1 %v285_v3  ;;  %v277_v13 = vld [vmem:[%s785_s2 + $0xa0] sm:$0xff]  ;;  %326 = vmatprep.subr.mxu0 %v293_v12  ;;  %v292_v14 = vld [vmem:[%s786_s3 + $0x10] sm:$0xff]  ;;  %v276_v15 = vld [vmem:[%s785_s2 + $0x98] sm:$0xff] }
  0x11   : > { %373 = vmatprep.subr.mxu1 %v284_v5  ;;  %327 = vmatpush1.msra.mxu0 %v292_v14  ;;  %v291_v16 = vld [vmem:[%s786_s3 + $0x8] sm:$0xff]  ;;  %v290_v17 = vld [vmem:[%s786_s3] sm:$0xff]  ;;  %v275_v18 = vld [vmem:[%s785_s2 + $0x90] sm:$0xff] }
  0x12   : > { %374 = vmatpush1.msra.mxu1 %v283_v6  ;;  %328 = vmatprep.subr.mxu0 %v291_v16  ;;  %v289_v19 = vld [vmem:[%s246_s24] sm:$0xff]  ;;  %v274_v20 = vld [vmem:[%s785_s2 + $0x88] sm:$0xff]  ;;  %v272_v22 = vld [vmem:[%s785_s2 + $0x78] sm:$0xff] }
  0x13   : > { %375 = vmatprep.subr.mxu1 %v282_v7  ;;  %329 = vmatpush1.msra.mxu0 %v290_v17  ;;  %v273_v21 = vld [vmem:[%s785_s2 + $0x80] sm:$0xff]  ;;  %v271_v23 = vld [vmem:[%s785_s2 + $0x70] sm:$0xff]  ;;  %v270_v24 = vld [vmem:[%s785_s2 + $0x68] sm:$0xff] }
  0x14   : > { %376 = vmatpush1.msra.mxu1 %v281_v8  ;;  %552 = vmatmul.mubr.msk.f32.vlgmr.msra.gmra.mxu0 %vm294_vm0, %v289_v19  ;;  %v269_v25 = vld [vmem:[%s785_s2 + $0x60] sm:$0xff]  ;;  %v268_v26 = vld [vmem:[%s785_s2 + $0x58] sm:$0xff]  ;;  %v267_v27 = vld [vmem:[%s785_s2 + $0x50] sm:$0xff] }
  0x15   : > { %377 = vmatprep.subr.mxu1 %v280_v9  ;;  %v266_v28 = vld [vmem:[%s785_s2 + $0x48] sm:$0xff]  ;;  %v265_v29 = vld [vmem:[%s785_s2 + $0x40] sm:$0xff]  ;;  %v264_v30 = vld [vmem:[%s785_s2 + $0x38] sm:$0xff] }
  0x16   : > { %378 = vmatpush1.msra.mxu1 %v279_v10  ;;  %v263_v31 = vld [vmem:[%s785_s2 + $0x30] sm:$0xff]  ;;  %v262_v32 = vld [vmem:[%s785_s2 + $0x28] sm:$0xff]  ;;  %v261_v33 = vld [vmem:[%s785_s2 + $0x20] sm:$0xff] }
  0x17   : > { %379 = vmatprep.subr.mxu1 %v278_v11  ;;  %v260_v34 = vld [vmem:[%s785_s2 + $0x18] sm:$0xff]  ;;  %v259_v35 = vld [vmem:[%s785_s2 + $0x10] sm:$0xff]  ;;  %v258_v36 = vld [vmem:[%s785_s2 + $0x8] sm:$0xff] }
  0x18   : > { %380 = vmatpush1.msra.mxu1 %v277_v13  ;;  %v257_v37 = vld [vmem:[%s785_s2] sm:$0xff] }
  0x19   : > { %381 = vmatprep.subr.mxu1 %v276_v15  ;;  %v256_v38 = vld [vmem:[%s239_s29] sm:$0xff] }
  0x1a   : > { %382 = vmatpush1.msra.mxu1 %v275_v18 }
  0x1b   : > { %383 = vmatprep.subr.mxu1 %v274_v20 }
  0x1c   : > { %384 = vmatpush1.msra.mxu1 %v273_v21 }
  0x1d   : > { %385 = vmatprep.subr.mxu1 %v272_v22 }
  0x1e   : > { %386 = vmatpush1.msra.mxu1 %v271_v23 }
  0x1f   : > { %387 = vmatprep.subr.mxu1 %v270_v24 }
  0x20   : > { %388 = vmatpush1.msra.mxu1 %v269_v25 }
  0x21   : > { %389 = vmatprep.subr.mxu1 %v268_v26 }
  0x22   : > { %390 = vmatpush1.msra.mxu1 %v267_v27 }
  0x23   : > { %391 = vmatprep.subr.mxu1 %v266_v28 }
  0x24   : > { %392 = vmatpush1.msra.mxu1 %v265_v29 }
  0x25   : > { %393 = vmatprep.subr.mxu1 %v264_v30 }
  0x26   : > { %394 = vmatpush1.msra.mxu1 %v263_v31 }
  0x27   : > { %395 = vmatprep.subr.mxu1 %v262_v32 }
  0x28   : > { %396 = vmatpush1.msra.mxu1 %v261_v33 }
  0x29   : > { %397 = vmatprep.subr.mxu1 %v260_v34 }
  0x2a   : > { %398 = vmatpush1.msra.mxu1 %v259_v35 }
  0x2b   : > { %399 = vmatprep.subr.mxu1 %v258_v36 }
  0x2c   : > { %400 = vmatpush1.msra.mxu1 %v257_v37 }
  0x2d   : > { %434 = vmatmul.mubr.f32.vlgmr.msra.gmra.mxu1 %v256_v38 }
  0xd4   : > { %v364_v39 = vpop.f32.mrf.mxu0 }
  0xd6   : > { %v366_v42 = vpop.f32.mrf.mxu0 }
  0xed   : > { %v435_v40 = vpop.f32.mrf.mxu1 }
  0xee   : > { %v436_v41 = vadd.f32 %v435_v40, %v364_v39 }
  0xef   : > { %v437_v43 = vpop.f32.mrf.mxu1 }
  0xf0   : > { %440 = vst [vmem:[%s255_s9] sm:$0xff] %v436_v41  ;;  %v438_v44 = vadd.f32 %v437_v43, %v366_v42 }
  0xf2   : > { %441 = vst [vmem:[%s255_s9 + $0x8] sm:$0xff] %v438_v44 }
  0xf3 PF: > { %s14_s17 = sadd.s32 1, %s603_s17   ;;  %s788_s15 = smov %s599_s16 }
  0xf4   : > { %p11_p5 = scmp.ge.s32.totalorder %s14_s17, 4   ;;  %s789_s16 = smov %s791_s18 }
  0xf6   :  { %13 = sbr.rel (!%p11_p5) target bundleno = 2 (0x2), region = 69 }

</bundles_post_ra>
